<compile_context>
chip_gen: v7x
topology: tpu7x:2x2x1
jax: 0.10.0
libtpu: 0.0.40
codegen_flags: <defaults>
</compile_context>

<pallas_src>
import jax
import jax.numpy as jnp
from jax.experimental import pallas as pl
from jax.experimental.pallas import tpu as pltpu

# ----------------------------- configuration ------------------------------
NUM_FREQS = 4                          # positional-encoding frequencies (2**k)
RAW_DIM = 4                            # rows = (u, v, s, t)
FREQ_DIM = RAW_DIM * NUM_FREQS         # 16 frequency-scaled rows
EMB_DIM = RAW_DIM + 2 * FREQ_DIM       # 36 embedded features feeding the trunk
HIDDEN = 64                            # field MLP width
CODE_DIM = 16                          # color_code width
HEAD_DIM = CODE_DIM + 2 + 2            # fused head rows: [code | epi_dir | epi_range]
OUT_ROWS = 8                           # packed output rows (7 used + 1 pad)
ROW_EPI_DIR = 0                        # rows 0..1
ROW_EPI_RANGE = 2                      # rows 2..3
ROW_RGB = 4                            # rows 4..6
MAX_TILE = 8192                        # rays per grid step (lane axis)
VMEM_LIMIT_BYTES = 40 * 1024 * 1024    # safe on v5e/v6e/v7x, covers TM=8192 easily
WEIGHT_DTYPE = jnp.bfloat16            # native MXU path on v6e/v7x; f32 accumulation


# ------------------------------- kernel -----------------------------------
def _sigmoid(x):
    # exact sigmoid (exp -> EUP); kernel is DMA/overhead bound, so no approx needed
    return 1.0 / (1.0 + jnp.exp(-x))


def nelf_kernel(raw_ref, w1_ref, w2_ref, b2_ref, wh_ref, bh_ref,
                wrgb_ref, brgb_ref, out_ref):
    # Transposed lane-dense layout: activations are [features, TM], rays on lanes.
    raw = raw_ref[...]                                          # [4, TM] f32

    # Sinusoidal positional encoding: one frequency-scaled [16, TM] block, one
    # sin and one cos call.  Any embedder concat ordering / include-input term
    # is absorbed into the column layout of W1 ([identity | sin | cos | bias]).
    # (If VALU-bound at large TM, replace sin/cos with a bounded-range polynomial.)
    scaled = jnp.concatenate(
        [raw * jnp.float32(2.0 ** k) for k in range(NUM_FREQS)], axis=0)
    sin_e = jnp.sin(scaled)                                     # [16, TM]
    cos_e = jnp.cos(scaled)                                     # [16, TM]
    ones = jnp.ones_like(raw[0:1, :])                           # [1, TM]

    # Trunk layer 1: single fused matmul, bias folded via the ones row.
    embed = jnp.concatenate([raw, sin_e, cos_e, ones],
                            axis=0).astype(WEIGHT_DTYPE)        # [37, TM]
    h = jnp.dot(w1_ref[...], embed,
                preferred_element_type=jnp.float32)             # [64, TM]
    h = jnp.maximum(h, 0.0)

    # Trunk layer 2.
    h = jnp.dot(w2_ref[...], h.astype(WEIGHT_DTYPE),
                preferred_element_type=jnp.float32) + b2_ref[...]
    h = jnp.maximum(h, 0.0)                                     # [64, TM]

    # Fused heads: one [20, 64] matmul.
    # Row layout: [0:16] color_code, [16:18] epi direction, [18:20] epi range.
    head = jnp.dot(wh_ref[...], h.astype(WEIGHT_DTYPE),
                   preferred_element_type=jnp.float32) + bh_ref[...]   # [20, TM]

    # TODO(synk): assumes the field applies ReLU to color_code before the rgb head.
    code = jnp.maximum(head[0:CODE_DIM, :], 0.0)                # [16, TM]

    e = head[CODE_DIM:CODE_DIM + 2, :]                          # [2, TM]
    e0 = e[0:1, :]
    e1 = e[1:2, :]
    # explicit 2-term sum (no cross-lane reduce); clamp like F.normalize(eps)
    inv_norm = jax.lax.rsqrt(jnp.maximum(e0 * e0 + e1 * e1, 1e-24))
    epi_dir = e * inv_norm                                      # [2, TM]

    epi_range = _sigmoid(head[CODE_DIM + 2:HEAD_DIM, :])        # [2, TM]

    rgb = _sigmoid(
        jnp.dot(wrgb_ref[...], code.astype(WEIGHT_DTYPE),
                preferred_element_type=jnp.float32) + brgb_ref[...])   # [3, TM]

    pad = jnp.zeros_like(e0)                                    # [1, TM]
    # Single lane-dense, sublane-exact (8, TM) store.
    out_ref[...] = jnp.concatenate([epi_dir, epi_range, rgb, pad], axis=0)


# ------------------------------ parameters ---------------------------------
def init_params(key):
    ks = jax.random.split(key, 6)

    def w(k, shape, scale=0.2):
        return scale * jax.random.normal(k, shape, dtype=jnp.float32)

    # Output-major weights; layer-1 bias folded as the last column (ones row).
    w1 = jnp.concatenate([
        w(ks[0], (HIDDEN, RAW_DIM)),             # identity (include-input) term
        w(ks[1], (HIDDEN, FREQ_DIM)),            # sin terms
        w(ks[2], (HIDDEN, FREQ_DIM)),            # cos terms
        jnp.zeros((HIDDEN, 1), jnp.float32),     # b1
    ], axis=1)                                   # [64, 37]

    return dict(
        w1=w1.astype(WEIGHT_DTYPE),
        w2=w(ks[3], (HIDDEN, HIDDEN)).astype(WEIGHT_DTYPE),
        b2=jnp.zeros((HIDDEN, 1), jnp.float32),
        wh=w(ks[4], (HEAD_DIM, HIDDEN)).astype(WEIGHT_DTYPE),
        bh=jnp.zeros((HEAD_DIM, 1), jnp.float32),
        wrgb=w(ks[5], (3, CODE_DIM)).astype(WEIGHT_DTYPE),
        brgb=jnp.zeros((3, 1), jnp.float32),
    )


# ------------------------------ wrapper -------------------------------------
def _pick_tile(n_rays: int) -> int:
    """Large ray tiles amortize per-grid-step overhead; keep >=2 grid steps and
    an even step count when possible so v7x can shard across its 2 TCs."""
    steps = max(2, 2 * ((n_rays + 2 * MAX_TILE - 1) // (2 * MAX_TILE)))
    tm = (n_rays + steps - 1) // steps
    tm = ((tm + 127) // 128) * 128
    return max(128, min(tm, MAX_TILE))


def _field_pallas(raw_padded, params, tm):
    """raw_padded: [4, Np] f32 (Np a multiple of tm). Returns packed [8, Np]."""
    n_pad = raw_padded.shape[1]
    grid = (n_pad // tm,)

    def full(arr):
        return pl.BlockSpec(arr.shape, lambda i: (0, 0))

    return pl.pallas_call(
        nelf_kernel,
        out_shape=jax.ShapeDtypeStruct((OUT_ROWS, n_pad), jnp.float32),
        grid=grid,
        in_specs=[
            pl.BlockSpec((RAW_DIM, tm), lambda i: (0, i)),
            full(params["w1"]), full(params["w2"]), full(params["b2"]),
            full(params["wh"]), full(params["bh"]),
            full(params["wrgb"]), full(params["brgb"]),
        ],
        out_specs=pl.BlockSpec((OUT_ROWS, tm), lambda i: (0, i)),
        compiler_params=pltpu.CompilerParams(
            dimension_semantics=("parallel",),
            vmem_limit_bytes=VMEM_LIMIT_BYTES),
    )(raw_padded, params["w1"], params["w2"], params["b2"],
      params["wh"], params["bh"], params["wrgb"], params["brgb"])


def nelf_field_forward(raw, params):
    """Fast path: coordinates already in kernel layout [4, N] (rows u,v,s,t).
    Returns the packed [8, N] field output (no extra wrapper layout passes)."""
    n = raw.shape[1]
    tm = _pick_tile(n)
    n_pad = pl.cdiv(n, tm) * tm
    if n_pad != n:
        raw = jnp.pad(raw, ((0, 0), (0, n_pad - n)))
    return _field_pallas(raw.astype(jnp.float32), params, tm)[:, :n]


@jax.jit
def nelf_range_epi_forward(uv, st, rays_color, params):
    """Inference forward of NeLFRangeEPI.forward_render.

    uv, st:      [b, n, 2] float32 ray coordinates
    rays_color:  [b, n, 3] float32 ground-truth colors
    Returns dict(color_map, epi_map, range_map, rec_loss).
    """
    b, n, _ = uv.shape
    N = b * n

    # Single layout pass (transpose+concat, fused by XLA) into the kernel's
    # lane-dense [4, N] layout.  Producing coordinates in [4, N] upstream
    # (nelf_field_forward) removes even this pass.
    raw = jnp.concatenate([uv.reshape(N, 2).T, st.reshape(N, 2).T],
                          axis=0).astype(jnp.float32)
    out = nelf_field_forward(raw, params)                       # [8, N]

    rgb = out[ROW_RGB:ROW_RGB + 3]                              # [3, N]
    color_map = rgb.T.reshape(b, n, 3)
    # torch.atan2(*epi_dir.split(1, 1)) == atan2(epi_dir[:, 0], epi_dir[:, 1])
    epi_map = jnp.arctan2(out[ROW_EPI_DIR], out[ROW_EPI_DIR + 1]).reshape(b, n, 1)
    range_map = out[ROW_EPI_RANGE].reshape(b, n)
    rec_loss = jnp.mean((color_map - rays_color.astype(jnp.float32)) ** 2)  # im2mse

    return {
        "color_map": color_map,
        "epi_map": epi_map,
        "range_map": range_map,
        "rec_loss": rec_loss,
    }


# ------------------------------- main --------------------------------------
if __name__ == "__main__":
    key = jax.random.PRNGKey(0)
    k_uv, k_st, k_c, k_p = jax.random.split(key, 4)

    b, n = 2, 128                                   # 256 rays total
    uv = jax.random.uniform(k_uv, (b, n, 2), jnp.float32, -1.0, 1.0)
    st = jax.random.uniform(k_st, (b, n, 2), jnp.float32, -1.0, 1.0)
    rays_color = jax.random.uniform(k_c, (b, n, 3), jnp.float32, 0.0, 1.0)

    params = init_params(k_p)

    out = nelf_range_epi_forward(uv, st, rays_color, params)
    jax.block_until_ready(out)

    assert out["color_map"].shape == (b, n, 3)
    assert out["epi_map"].shape == (b, n, 1)
    assert out["range_map"].shape == (b, n)
    assert out["rec_loss"].shape == ()
    assert bool(jnp.isfinite(out["rec_loss"]))
    assert bool(jnp.all(jnp.isfinite(out["color_map"])))
    assert bool(jnp.all(jnp.isfinite(out["epi_map"])))
    assert bool(jnp.all((out["range_map"] >= 0.0) & (out["range_map"] <= 1.0)))

    print("KERNEL_OK")
</pallas_src>

<mosaic_0001>
module attributes {stable_mosaic.version = 11 : i64} {
  func.func @nelf_kernel(%arg0: i32, %arg1: memref<4x128xf32, #tpu.memory_space<vmem>>, %arg2: memref<64x37xbf16, #tpu.memory_space<vmem>>, %arg3: memref<64x64xbf16, #tpu.memory_space<vmem>>, %arg4: memref<64x1xf32, #tpu.memory_space<vmem>>, %arg5: memref<20x64xbf16, #tpu.memory_space<vmem>>, %arg6: memref<20x1xf32, #tpu.memory_space<vmem>>, %arg7: memref<3x16xbf16, #tpu.memory_space<vmem>>, %arg8: memref<3x1xf32, #tpu.memory_space<vmem>>, %arg9: memref<8x128xf32, #tpu.memory_space<vmem>>) attributes {dimension_semantics = [#tpu.dimension_semantics<parallel>], iteration_bounds = array<i64: 2>, scalar_prefetch = 0 : i64, scratch_operands = 0 : i64, tpu.core_type = #tpu.core_type<tc>, window_params = [{transform_indices = @transform_0, window_bounds = array<i64: 4, 128>}, {pipeline_mode = #tpu.pipeline_mode<synchronous>, transform_indices = @transform_1, window_bounds = array<i64: 64, 37>}, {pipeline_mode = #tpu.pipeline_mode<synchronous>, transform_indices = @transform_2, window_bounds = array<i64: 64, 64>}, {pipeline_mode = #tpu.pipeline_mode<synchronous>, transform_indices = @transform_3, window_bounds = array<i64: 64, 1>}, {pipeline_mode = #tpu.pipeline_mode<synchronous>, transform_indices = @transform_4, window_bounds = array<i64: 20, 64>}, {pipeline_mode = #tpu.pipeline_mode<synchronous>, transform_indices = @transform_5, window_bounds = array<i64: 20, 1>}, {pipeline_mode = #tpu.pipeline_mode<synchronous>, transform_indices = @transform_6, window_bounds = array<i64: 3, 16>}, {pipeline_mode = #tpu.pipeline_mode<synchronous>, transform_indices = @transform_7, window_bounds = array<i64: 3, 1>}, {transform_indices = @transform_8, window_bounds = array<i64: 8, 128>}]} {
    %c0 = arith.constant 0 : index
    %c0_0 = arith.constant 0 : index
    %0 = vector.load %arg1[%c0, %c0_0] : memref<4x128xf32, #tpu.memory_space<vmem>>, vector<4x128xf32>
    %cst = arith.constant 1.000000e+00 : f32
    %1 = vector.broadcast %cst : f32 to vector<4x128xf32>
    %2 = arith.mulf %0, %1 : vector<4x128xf32>
    %cst_1 = arith.constant 2.000000e+00 : f32
    %3 = vector.broadcast %cst_1 : f32 to vector<4x128xf32>
    %4 = arith.mulf %0, %3 : vector<4x128xf32>
    %cst_2 = arith.constant 4.000000e+00 : f32
    %5 = vector.broadcast %cst_2 : f32 to vector<4x128xf32>
    %6 = arith.mulf %0, %5 : vector<4x128xf32>
    %cst_3 = arith.constant 8.000000e+00 : f32
    %7 = vector.broadcast %cst_3 : f32 to vector<4x128xf32>
    %8 = arith.mulf %0, %7 : vector<4x128xf32>
    %9 = tpu.concatenate %2, %4, %6, %8 in 0 : vector<4x128xf32>, vector<4x128xf32>, vector<4x128xf32>, vector<4x128xf32> -> vector<16x128xf32>
    %10 = math.sin %9 : vector<16x128xf32>
    %11 = math.cos %9 : vector<16x128xf32>
    %cst_4 = arith.constant 1.000000e+00 : f32
    %12 = vector.broadcast %cst_4 : f32 to vector<1x128xf32>
    %13 = tpu.concatenate %0, %10, %11, %12 in 0 : vector<4x128xf32>, vector<16x128xf32>, vector<16x128xf32>, vector<1x128xf32> -> vector<37x128xf32>
    %14 = arith.truncf %13 : vector<37x128xf32> to vector<37x128xbf16>
    %c0_5 = arith.constant 0 : index
    %c0_6 = arith.constant 0 : index
    %15 = vector.load %arg2[%c0_5, %c0_6] : memref<64x37xbf16, #tpu.memory_space<vmem>>, vector<64x37xbf16>
    %cst_7 = arith.constant dense<0.000000e+00> : vector<64x128xf32>
    %16 = tpu.matmul %15, %14, %cst_7 {dimension_numbers = #tpu.dot_dimension_numbers<[1], [0], [0], [1], [0, 0, 1, 1], [], []>} : vector<64x37xbf16>, vector<37x128xbf16>, vector<64x128xf32> -> vector<64x128xf32>
    %cst_8 = arith.constant 0.000000e+00 : f32
    %17 = vector.broadcast %cst_8 : f32 to vector<64x128xf32>
    %18 = arith.maximumf %16, %17 : vector<64x128xf32>
    %c0_9 = arith.constant 0 : index
    %c0_10 = arith.constant 0 : index
    %19 = vector.load %arg3[%c0_9, %c0_10] : memref<64x64xbf16, #tpu.memory_space<vmem>>, vector<64x64xbf16>
    %20 = arith.truncf %18 : vector<64x128xf32> to vector<64x128xbf16>
    %cst_11 = arith.constant dense<0.000000e+00> : vector<64x128xf32>
    %21 = tpu.matmul %19, %20, %cst_11 {dimension_numbers = #tpu.dot_dimension_numbers<[1], [0], [0], [1], [0, 0, 1, 1], [], []>} : vector<64x64xbf16>, vector<64x128xbf16>, vector<64x128xf32> -> vector<64x128xf32>
    %c0_12 = arith.constant 0 : index
    %c0_13 = arith.constant 0 : index
    %22 = vector.load %arg4[%c0_12, %c0_13] : memref<64x1xf32, #tpu.memory_space<vmem>>, vector<64x1xf32>
    %23 = vector.broadcast %22 : vector<64x1xf32> to vector<64x128xf32>
    %24 = arith.addf %21, %23 : vector<64x128xf32>
    %cst_14 = arith.constant 0.000000e+00 : f32
    %25 = vector.broadcast %cst_14 : f32 to vector<64x128xf32>
    %26 = arith.maximumf %24, %25 : vector<64x128xf32>
    %c0_15 = arith.constant 0 : index
    %c0_16 = arith.constant 0 : index
    %27 = vector.load %arg5[%c0_15, %c0_16] : memref<20x64xbf16, #tpu.memory_space<vmem>>, vector<20x64xbf16>
    %28 = arith.truncf %26 : vector<64x128xf32> to vector<64x128xbf16>
    %cst_17 = arith.constant dense<0.000000e+00> : vector<20x128xf32>
    %29 = tpu.matmul %27, %28, %cst_17 {dimension_numbers = #tpu.dot_dimension_numbers<[1], [0], [0], [1], [0, 0, 1, 1], [], []>} : vector<20x64xbf16>, vector<64x128xbf16>, vector<20x128xf32> -> vector<20x128xf32>
    %c0_18 = arith.constant 0 : index
    %c0_19 = arith.constant 0 : index
    %30 = vector.load %arg6[%c0_18, %c0_19] : memref<20x1xf32, #tpu.memory_space<vmem>>, vector<20x1xf32>
    %31 = vector.broadcast %30 : vector<20x1xf32> to vector<20x128xf32>
    %32 = arith.addf %29, %31 : vector<20x128xf32>
    %33 = vector.extract_strided_slice %32 {offsets = [0, 0], sizes = [16, 128], strides = [1, 1]} : vector<20x128xf32> to vector<16x128xf32>
    %cst_20 = arith.constant 0.000000e+00 : f32
    %34 = vector.broadcast %cst_20 : f32 to vector<16x128xf32>
    %35 = arith.maximumf %33, %34 : vector<16x128xf32>
    %36 = vector.extract_strided_slice %32 {offsets = [16, 0], sizes = [2, 128], strides = [1, 1]} : vector<20x128xf32> to vector<2x128xf32>
    %37 = vector.extract_strided_slice %36 {offsets = [0, 0], sizes = [1, 128], strides = [1, 1]} : vector<2x128xf32> to vector<1x128xf32>
    %38 = vector.extract_strided_slice %36 {offsets = [1, 0], sizes = [1, 128], strides = [1, 1]} : vector<2x128xf32> to vector<1x128xf32>
    %39 = arith.mulf %37, %37 : vector<1x128xf32>
    %40 = arith.mulf %38, %38 : vector<1x128xf32>
    %41 = arith.addf %39, %40 : vector<1x128xf32>
    %cst_21 = arith.constant 1.000000e-24 : f32
    %42 = vector.broadcast %cst_21 : f32 to vector<1x128xf32>
    %43 = arith.maximumf %41, %42 : vector<1x128xf32>
    %44 = math.rsqrt %43 : vector<1x128xf32>
    %45 = vector.broadcast %44 : vector<1x128xf32> to vector<2x128xf32>
    %46 = arith.mulf %36, %45 : vector<2x128xf32>
    %47 = vector.extract_strided_slice %32 {offsets = [18, 0], sizes = [2, 128], strides = [1, 1]} : vector<20x128xf32> to vector<2x128xf32>
    %cst_22 = arith.constant 0.000000e+00 : f32
    %48 = vector.broadcast %cst_22 : f32 to vector<2x128xf32>
    %49 = arith.subf %48, %47 : vector<2x128xf32>
    %50 = math.exp %49 : vector<2x128xf32>
    %cst_23 = arith.constant 1.000000e+00 : f32
    %51 = vector.broadcast %cst_23 : f32 to vector<2x128xf32>
    %52 = arith.addf %51, %50 : vector<2x128xf32>
    %cst_24 = arith.constant 1.000000e+00 : f32
    %53 = vector.broadcast %cst_24 : f32 to vector<2x128xf32>
    %54 = arith.divf %53, %52 : vector<2x128xf32>
    %c0_25 = arith.constant 0 : index
    %c0_26 = arith.constant 0 : index
    %55 = vector.load %arg7[%c0_25, %c0_26] : memref<3x16xbf16, #tpu.memory_space<vmem>>, vector<3x16xbf16>
    %56 = arith.truncf %35 : vector<16x128xf32> to vector<16x128xbf16>
    %cst_27 = arith.constant dense<0.000000e+00> : vector<3x128xf32>
    %57 = tpu.matmul %55, %56, %cst_27 {dimension_numbers = #tpu.dot_dimension_numbers<[1], [0], [0], [1], [0, 0, 1, 1], [], []>} : vector<3x16xbf16>, vector<16x128xbf16>, vector<3x128xf32> -> vector<3x128xf32>
    %c0_28 = arith.constant 0 : index
    %c0_29 = arith.constant 0 : index
    %58 = vector.load %arg8[%c0_28, %c0_29] : memref<3x1xf32, #tpu.memory_space<vmem>>, vector<3x1xf32>
    %59 = vector.broadcast %58 : vector<3x1xf32> to vector<3x128xf32>
    %60 = arith.addf %57, %59 : vector<3x128xf32>
    %cst_30 = arith.constant 0.000000e+00 : f32
    %61 = vector.broadcast %cst_30 : f32 to vector<3x128xf32>
    %62 = arith.subf %61, %60 : vector<3x128xf32>
    %63 = math.exp %62 : vector<3x128xf32>
    %cst_31 = arith.constant 1.000000e+00 : f32
    %64 = vector.broadcast %cst_31 : f32 to vector<3x128xf32>
    %65 = arith.addf %64, %63 : vector<3x128xf32>
    %cst_32 = arith.constant 1.000000e+00 : f32
    %66 = vector.broadcast %cst_32 : f32 to vector<3x128xf32>
    %67 = arith.divf %66, %65 : vector<3x128xf32>
    %cst_33 = arith.constant 0.000000e+00 : f32
    %68 = vector.broadcast %cst_33 : f32 to vector<1x128xf32>
    %69 = tpu.concatenate %46, %54, %67, %68 in 0 : vector<2x128xf32>, vector<2x128xf32>, vector<3x128xf32>, vector<1x128xf32> -> vector<8x128xf32>
    %c0_34 = arith.constant 0 : index
    %c0_35 = arith.constant 0 : index
    %70 = vector.load %arg9[%c0_34, %c0_35] : memref<8x128xf32, #tpu.memory_space<vmem>>, vector<8x128xf32>
    tpu.vector_store %arg9[%c0_34, %c0_35], %69 {strides = array<i32>} : memref<8x128xf32, #tpu.memory_space<vmem>>, vector<8x128xf32>,
    return
  }
  func.func @transform_0(%arg0: i32) -> (i32, i32) {
    %c0_i32 = arith.constant 0 : i32
    %c0_i32_0 = arith.constant 0 : i32
    return %c0_i32, %arg0 : i32, i32
  }
  func.func @transform_1(%arg0: i32) -> (i32, i32) {
    %c0_i32 = arith.constant 0 : i32
    %c0_i32_0 = arith.constant 0 : i32
    %c0_i32_1 = arith.constant 0 : i32
    return %c0_i32, %c0_i32_0 : i32, i32
  }
  func.func @transform_2(%arg0: i32) -> (i32, i32) {
    %c0_i32 = arith.constant 0 : i32
    %c0_i32_0 = arith.constant 0 : i32
    %c0_i32_1 = arith.constant 0 : i32
    return %c0_i32, %c0_i32_0 : i32, i32
  }
  func.func @transform_3(%arg0: i32) -> (i32, i32) {
    %c0_i32 = arith.constant 0 : i32
    %c0_i32_0 = arith.constant 0 : i32
    %c0_i32_1 = arith.constant 0 : i32
    return %c0_i32, %c0_i32_0 : i32, i32
  }
  func.func @transform_4(%arg0: i32) -> (i32, i32) {
    %c0_i32 = arith.constant 0 : i32
    %c0_i32_0 = arith.constant 0 : i32
    %c0_i32_1 = arith.constant 0 : i32
    return %c0_i32, %c0_i32_0 : i32, i32
  }
  func.func @transform_5(%arg0: i32) -> (i32, i32) {
    %c0_i32 = arith.constant 0 : i32
    %c0_i32_0 = arith.constant 0 : i32
    %c0_i32_1 = arith.constant 0 : i32
    return %c0_i32, %c0_i32_0 : i32, i32
  }
  func.func @transform_6(%arg0: i32) -> (i32, i32) {
    %c0_i32 = arith.constant 0 : i32
    %c0_i32_0 = arith.constant 0 : i32
    %c0_i32_1 = arith.constant 0 : i32
    return %c0_i32, %c0_i32_0 : i32, i32
  }
  func.func @transform_7(%arg0: i32) -> (i32, i32) {
    %c0_i32 = arith.constant 0 : i32
    %c0_i32_0 = arith.constant 0 : i32
    %c0_i32_1 = arith.constant 0 : i32
    return %c0_i32, %c0_i32_0 : i32, i32
  }
  func.func @transform_8(%arg0: i32) -> (i32, i32) {
    %c0_i32 = arith.constant 0 : i32
    %c0_i32_0 = arith.constant 0 : i32
    return %c0_i32, %arg0 : i32, i32
  }
}

</mosaic_0001>

<bundles_post_ra>
// kernel: nelf_range_epi_forward.1
= control target key start
LH: loop header
LB: loop body
LE: loop exit
PB: predicated region body
PF: predicated region fallthrough
CT: control target
= control target key end

     0   :  { %s1500_s27 = smov 0   ;;  %s1687_s0 = inlined_call_operand.vmem [shape: f32[4,256], index: 0, kind: input, shape index: {}]   ;;  %s1688_s1 = inlined_call_operand.vmem [shape: bf16[64,37], index: 1, kind: input, shape index: {}]   ;;  %s1689_s2 = inlined_call_operand.vmem [shape: bf16[64,64], index: 2, kind: input, shape index: {}]   ;;  %s1690_s3 = inlined_call_operand.vmem [shape: f32[64,1], index: 3, kind: input, shape index: {}]   ;;  %s1691_s4 = inlined_call_operand.vmem [shape: bf16[20,64], index: 4, kind: input, shape index: {}]   ;;  %s1692_s5 = inlined_call_operand.vmem [shape: f32[20,1], index: 5, kind: input, shape index: {}]   ;;  %s1693_s6 = inlined_call_operand.vmem [shape: bf16[3,16], index: 6, kind: input, shape index: {}]   ;;  %s1694_s7 = inlined_call_operand.vmem [shape: f32[3,1], index: 7, kind: input, shape index: {}]   ;;  %s1695_s8 = inlined_call_operand.vmem [shape: f32[8,256], index: 8, kind: output, shape index: {}]  }
   0x1 LB: > { %s1264_s28 = sadd.s32 4294967295, %s1443_s27   ;;  %p1268_p0 = scmp.ge.s32.totalorder %s1443_s27, 1  ;;  %s1443_s27 = sphi %s1500_s27, %s18_s27  }
   0x2   : > { %p261_p1 = scmp.lt.s32.totalorder %s1443_s27, 3 }
   0x4   : > { %p262_p2 = pnand %p1268_p0, %p261_p1 }
   0x5   : > { %p293_p3 = scmp.lt.s32.totalorder (!%p262_p2), %s1264_s28, 1  ;;  %v1409_v0 = vld [vmem:[%s1688_s1] sm:$0xff] (!%p262_p2)   ;;  %vm779_vm0 = vcmask (!%p262_p2), 302080   ;;  %vm312_vm1 = vcmask (!%p262_p2), 1043456   ;;  %v1445_v31 = vmov (!%p262_p2), 683565275  }
   0x6   : > { %265 = sbr.rel (%p262_p2) target bundleno = 1071 (0x42f), region = 52  ;;  %1339 = vmatprep.mubr.msk.bf16.mxu0 (!%p262_p2), %vm779_vm0, %v1409_v0  ;;  %v1446_v33 = vmov (!%p262_p2), 2475754826   ;;  %v1447_v35 = vmov (!%p262_p2), 2131351028  }
   0x7   : > { %v1448_v37 = vmov (!%p262_p2), 2102212464   ;;  %v1449_v39 = vmov (!%p262_p2), 920167782   ;;  %v1450_v47 = vmov (!%p262_p2), 1326507024  }
   0xd   : > { %s1697_s28 = smov (!%p293_p3, %s1264_s28), 1 }
   0xe   : > { %s1269_s9 = sshll.u32 %s1697_s28, 2  ;;  %s1270_s17 = sshll.u32 %s1697_s28, 3 }
   0xf   : > { %s296_s12 = scalar_lea.vmem %s1687_s0, %s1269_s9  ;;  %s300_s20 = scalar_lea.vmem %s1695_s8, %s1270_s17 }
  0x10   : > { %v1518_v1 = vld [vmem:[%s296_s12] sm:$0xf] }
  0x11   : > { %v303_v2 = vmul.f32 2.0, %v1518_v1  ;;  %v304_v3 = vmul.f32 4.0, %v1518_v1  ;;  %v305_v4 = vmul.f32 8.0, %v1518_v1 }
  0x13   : > { %v307_v5 = vrot.slane %v303_v2, 4  ;;  %v310_v6 = vrot.slane %v305_v4, 4 }
  0x15   : > { %v1525_v7 = vsel %vm312_vm1, %v1518_v1, %v307_v5  ;;  %v1528_v8 = vsel %vm312_vm1, %v304_v3, %v310_v6 }
  0x16   : > { %v315_v9 = vand.u32 2147483647, %v1525_v7  ;;  %v318_v10 = vand.u32 2139095040, %v1525_v7  ;;  %v419_v11 = vand.u32 2147483647, %v1528_v8  ;;  %v422_v12 = vand.u32 2139095040, %v1528_v8 }
  0x18   : > { %v319_v13 = vshrl.u32 %v318_v10, 23  ;;  %v322_v14 = vand.u32 8388607, %v315_v9  ;;  %v423_v15 = vshrl.u32 %v422_v12, 23  ;;  %v426_v16 = vand.u32 8388607, %v419_v11 }
  0x1a   : > { %v1271_v17 = vadd.s32 4294967169, %v319_v13  ;;  %v1275_v18 = vadd.s32 4294967169, %v423_v15  ;;  %v323_v20 = vor.u32 8388608, %v322_v14  ;;  %v427_v21 = vor.u32 8388608, %v426_v16 }
  0x1c   : > { %v325_v19 = vadd.s32 1, %v1271_v17  ;;  %v429_v22 = vadd.s32 1, %v1275_v18  ;;  %v1538_v27 = vshll.u32 %v323_v20, 8  ;;  %v1540_v29 = vshll.u32 %v427_v21, 8 }
  0x1e   : > { %vm326_vm2 = vcmp.gt.s32.totalorder %v325_v19, 0  ;;  %vm430_vm3 = vcmp.gt.s32.totalorder %v429_v22, 0 }
  0x1f   : > { %v327_v23 = vsel %vm326_vm2, %v325_v19, 0  ;;  %v431_v26 = vsel %vm430_vm3, %v429_v22, 0  ;;  %vm317_vm2 = vcmp.lt.s32.totalorder %v1525_v7, 0  ;;  %vm316_vm3 = vcmp.le.f32.partialorder %v315_v9, 0.7853982 }
  0x20   : > { %v328_v24 = vshrl.u32 %v327_v23, 5  ;;  %v329_v25 = vand.u32 31, %v327_v23  ;;  %v433_v28 = vand.u32 31, %v431_v26  ;;  %v1542_v41 = vshrl.u32 %v431_v26, 5 }
  0x22   : > { %v330_v30 = vsub.s32 32, %v329_v25  ;;  %v332_v32 = vshll.u32 %v1445_v31, %v329_v25  ;;  %v335_v34 = vshll.u32 %v1446_v33, %v329_v25  ;;  %v338_v36 = vshll.u32 %v1447_v35, %v329_v25 }
  0x23   : > { %v341_v38 = vshll.u32 %v1448_v37, %v329_v25  ;;  %v344_v40 = vshll.u32 %v1449_v39, %v329_v25  ;;  %vm347_vm4 = vcmp.lt.s32.totalorder %v328_v24, 1  ;;  %vm348_vm5 = vcmp.lt.s32.totalorder %v328_v24, 2 }
  0x24   : > { %v331_v42 = vshrl.u32 %v1445_v31, %v330_v30  ;;  %v333_v43 = vshrl.u32 %v1446_v33, %v330_v30  ;;  %v336_v44 = vshrl.u32 %v1447_v35, %v330_v30  ;;  %v339_v45 = vshrl.u32 %v1448_v37, %v330_v30 }
  0x25   : > { %v342_v46 = vshrl.u32 %v1449_v39, %v330_v30  ;;  %v345_v48 = vshrl.u32 %v1450_v47, %v330_v30  ;;  %vm350_vm6 = vcmp.lt.s32.totalorder %v328_v24, 4  ;;  %v434_v52 = vsub.s32 32, %v433_v28 }
  0x26   : > { %v334_v49 = vor.u32 %v333_v43, %v332_v32  ;;  %v337_v50 = vor.u32 %v336_v44, %v335_v34  ;;  %v340_v51 = vor.u32 %v339_v45, %v338_v36  ;;  %vm349_vm7 = vcmp.lt.s32.totalorder %v328_v24, 3 }
  0x27   : > { %v343_v53 = vor.u32 %v342_v46, %v341_v38  ;;  %v346_v54 = vor.u32 %v345_v48, %v344_v40  ;;  %v436_v55 = vshll.u32 %v1445_v31, %v433_v28  ;;  %v439_v63 = vshll.u32 %v1446_v33, %v433_v28 }
  0x28   : > { %v351_v56 = vsel %vm347_vm4, %v331_v42, %v334_v49  ;;  %v352_v57 = vsel %vm350_vm6, %v340_v51, 2102212464  ;;  %v355_v58 = vsel %vm347_vm4, %v334_v49, %v337_v50  ;;  %v359_v59 = vsel %vm347_vm4, %v337_v50, %v340_v51 }
  0x29   : > { %v353_v60 = vsel %vm349_vm7, %v337_v50, %v352_v57  ;;  %v356_v61 = vsel %vm350_vm6, %v343_v53, 920167782  ;;  %v360_v62 = vsel %vm350_vm6, %v346_v54, 1326507024  ;;  %v435_v3 = vshrl.u32 %v1445_v31, %v434_v52 }
  0x2a   : > { %v357_v0 = vsel %vm349_vm7, %v340_v51, %v356_v61  ;;  %v361_v2 = vsel %vm349_vm7, %v343_v53, %v360_v62  ;;  %v437_v4 = vshrl.u32 %v1446_v33, %v434_v52  ;;  %v354_v5 = vsel %vm348_vm5, %v351_v56, %v353_v60 }
  0x2b   : > { %v358_v6 = vsel %vm348_vm5, %v355_v58, %v357_v0  ;;  %v362_v10 = vsel %vm348_vm5, %v359_v59, %v361_v2  ;;  %v440_v12 = vshrl.u32 %v1447_v35, %v434_v52  ;;  %v442_v19 = vshll.u32 %v1447_v35, %v433_v28 }
  0x2c   : > { %v1551_v13 = vmul.u32.u64.low %v1538_v27, %v362_v10  ;;  %v1552_v14 = vmul.u32.u64.high %v1538_v27, %v362_v10, %v1551_v13  ;;  %v1555_v15 = vmul.u32.u64.low %v1538_v27, %v358_v6  ;;  %v1556_v16 = vmul.u32.u64.high %v1538_v27, %v358_v6, %v1555_v15 }
  0x2d   : > { %v438_v17 = vor.u32 %v437_v4, %v436_v55  ;;  %v441_v18 = vor.u32 %v440_v12, %v439_v63  ;;  %v443_v20 = vshrl.u32 %v1448_v37, %v434_v52  ;;  %v445_v21 = vshll.u32 %v1448_v37, %v433_v28 }
  0x2e   : > { %v446_v22 = vshrl.u32 %v1449_v39, %v434_v52  ;;  %v448_v23 = vshll.u32 %v1449_v39, %v433_v28  ;;  %v449_v25 = vshrl.u32 %v1450_v47, %v434_v52  ;;  %v370_v24 = vmul.u32 %v1538_v27, %v354_v5 }
  0x2f   : > { %v444_v26 = vor.u32 %v443_v20, %v442_v19  ;;  %vm451_vm8 = vcmp.lt.s32.totalorder %v1542_v41, 1  ;;  %vm452_vm9 = vcmp.lt.s32.totalorder %v1542_v41, 2  ;;  %vm372_vm10 = vc.u32 %v1552_v14, %v1555_v15 }
  0x30   : > { %v373_v30 = vadd.s32 1, %v1556_v16  ;;  %v447_v31 = vor.u32 %v446_v22, %v445_v21  ;;  %vm453_vm11 = vcmp.lt.s32.totalorder %v1542_v41, 3  ;;  %v450_v32 = vor.u32 %v449_v25, %v448_v23 }
  0x31   : > { %vm454_vm12 = vcmp.lt.s32.totalorder %v1542_v41, 4  ;;  %v455_v33 = vsel %vm451_vm8, %v435_v3, %v438_v17  ;;  %v459_v28 = vsel %vm451_vm8, %v438_v17, %v441_v18  ;;  %v463_v36 = vsel %vm451_vm8, %v441_v18, %v444_v26 }
  0x32   : > { %v374_v34 = vsel %vm372_vm10, %v373_v30, %v1556_v16  ;;  %v456_v27 = vsel %vm454_vm12, %v444_v26, 2102212464  ;;  %v460_v35 = vsel %vm454_vm12, %v447_v31, 920167782  ;;  %v464_v40 = vsel %vm454_vm12, %v450_v32, 1326507024 }
  0x33   : > { %v375_v37 = vadd.s32 %v374_v34, %v370_v24  ;;  %v457_v38 = vsel %vm453_vm11, %v441_v18, %v456_v27  ;;  %v461_v39 = vsel %vm453_vm11, %v444_v26, %v460_v35  ;;  %v465_v44 = vsel %vm453_vm11, %v447_v31, %v464_v40 }
  0x34   : > { %v458_v42 = vsel %vm452_vm9, %v455_v33, %v457_v38  ;;  %v462_v43 = vsel %vm452_vm9, %v459_v28, %v461_v39  ;;  %v466_v46 = vsel %vm452_vm9, %v463_v36, %v465_v44  ;;  %v371_v2 = vadd.s32 %v1555_v15, %v1552_v14 }
  0x35   : > { %v376_v45 = vadd.s32 536870912, %v375_v37  ;;  %v1573_v47 = vmul.u32.u64.low %v1540_v29, %v462_v43  ;;  %v1574_v48 = vmul.u32.u64.high %v1540_v29, %v462_v43, %v1573_v47  ;;  %v474_v52 = vmul.u32 %v1540_v29, %v458_v42 }
  0x36   : > { %v1577_v49 = vmul.u32.u64.low %v1540_v29, %v466_v46  ;;  %v1578_v50 = vmul.u32.u64.high %v1540_v29, %v466_v46, %v1577_v49  ;;  %vm421_vm4 = vcmp.lt.s32.totalorder %v1528_v8, 0  ;;  %vm420_vm5 = vcmp.le.f32.partialorder %v419_v11, 0.7853982 }
  0x37   : > { %v377_v51 = vshrl.u32 %v376_v45, 30  ;;  %v477_v54 = vadd.s32 1, %v1574_v48  ;;  %vm407_vm12 = vweird.f32 %v1525_v7 }
  0x38   : > { %vm476_vm13 = vc.u32 %v1578_v50, %v1573_v47  ;;  %v475_v22 = vadd.s32 %v1573_v47, %v1578_v50 }
  0x39   : > { %v378_v53 = vshll.u32 %v377_v51, 30  ;;  %v478_v41 = vsel %vm476_vm13, %v477_v54, %v1574_v48  ;;  %v401_v14 = vsub.s32 4, %v377_v51 }
  0x3a   : > { %v479_v56 = vadd.s32 %v478_v41, %v474_v52 }
  0x3b   : > { %v379_v55 = vsub.s32 %v375_v37, %v378_v53  ;;  %v402_v28 = vsel %vm317_vm2, %v401_v14, %v377_v51 }
  0x3c   : > { %v480_v58 = vadd.s32 536870912, %v479_v56  ;;  %v404_v37 = vsel %vm316_vm3, 0, %v402_v28  ;;  %v1412_v28 = vld [vmem:[%s1688_s1 + $0x18] sm:$0xff]  }
  0x3d   : > { %v381_v57 = vsub.s32 0, %v379_v55  ;;  %v408_v43 = vadd.s32 3, %v404_v37  ;;  %v616_v50 = vand.u32 3, %v404_v37  ;;  %v885_v37 = vld [vmem:[%s1690_s3 + $0x8] sm:$0xff] }
  0x3e   : > { %v481_v60 = vshrl.u32 %v480_v58, 30 }
  0x3f   : > { %v1272_v59 = vmin.u32 %v381_v57, %v379_v55  ;;  %v409_v46 = vand.u32 3, %v408_v43  ;;  %vm618_vm8 = vcmp.eq.s32.totalorder %v616_v50, 0  ;;  %vm621_vm9 = vcmp.eq.s32.totalorder %v616_v50, 2  ;;  %v891_v43 = vld [vmem:[%s1690_s3 + $0x38] sm:$0xff] }
  0x40   : > { %v482_v62 = vshll.u32 %v481_v60, 30  ;;  %v505_v42 = vsub.s32 4, %v481_v60  ;;  %vm617_vm11 = vcmp.lt.s32.totalorder %v616_v50, 2 }
  0x41   : > { %v383_v61 = vclz %v1272_v59  ;;  %vm414_vm6 = vcmp.eq.s32.totalorder %v409_v46, 2  ;;  %vm411_vm7 = vcmp.eq.s32.totalorder %v409_v46, 0  ;;  %vm410_vm10 = vcmp.lt.s32.totalorder %v409_v46, 2  ;;  %v1047_v46 = vld [vmem:[%s1692_s5 + $0x10] sm:$0xf] }
  0x42   : > { %v483_v0 = vsub.s32 %v479_v56, %v482_v62  ;;  %v506_v45 = vsel %vm421_vm4, %v505_v42, %v481_v60  ;;  %v890_v42 = vld [vmem:[%s1690_s3 + $0x30] sm:$0xff] }
  0x43   : > { %v1273_v63 = vadd.s32 4294967294, %v383_v61  ;;  %v508_v49 = vsel %vm420_vm5, 0, %v506_v45  ;;  %v1147_v45 = vld [vmem:[%s1694_s7] sm:$0x7] }
  0x44   : > { %v485_v3 = vsub.s32 0, %v483_v0  ;;  %v512_v54 = vadd.s32 3, %v508_v49  ;;  %v719_v59 = vand.u32 3, %v508_v49 }
  0x45   : > { %vm1274_vm14 = vcmp.lt.s32.totalorder %v1273_v63, 0 }
  0x46   : > { %v386_v29 = vsel %vm1274_vm14, 0, %v1273_v63  ;;  %v1276_v10 = vmin.u32 %v485_v3, %v483_v0  ;;  %v513_v56 = vand.u32 3, %v512_v54  ;;  %vm724_vm14 = vcmp.eq.s32.totalorder %v719_v59, 2 }
  0x47   : > { %v387_v4 = vsub.s32 32, %v386_v29  ;;  %v388_v5 = vshll.u32 %v379_v55, %v386_v29  ;;  %v391_v6 = vsub.s32 4294967266, %v386_v29 }
  0x48   : > { %v487_v16 = vclz %v1276_v10  ;;  %vm518_vm13 = vcmp.eq.s32.totalorder %v513_v56, 2 }
  0x49   : > { %v389_v12 = vshrl.u32 %v371_v2, %v387_v4  ;;  %v392_v13 = vadd.s32 127, %v391_v6 }
  0x4a   : > { %v1277_v19 = vadd.s32 4294967294, %v487_v16 }
  0x4b   : > { %v390_v17 = vor.u32 %v389_v12, %v388_v5  ;;  %v393_v18 = vshll.u32 %v392_v13, 23 }
  0x4c   : > { %vm1278_vm15 = vcmp.lt.s32.totalorder %v1277_v19, 0 }
  0x4d   : > { %v394_v20 = vor.u32 4788187, %v393_v18  ;;  %v397_v21 = vcvt.s32.f32 %v390_v17  ;;  %v490_v15 = vsel %vm1278_vm15, 0, %v1277_v19  ;;  %vm515_vm15 = vcmp.eq.s32.totalorder %v513_v56, 0 }
  0x4e   : > { %v491_v25 = vsub.s32 32, %v490_v15  ;;  %v492_v24 = vshll.u32 %v483_v0, %v490_v15  ;;  %v495_v26 = vsub.s32 4294967266, %v490_v15 }
  0x4f   : > { %v395_v23 = vand.u32 2147483647, %v394_v20 }
  0x50   : > { %v493_v31 = vshrl.u32 %v475_v22, %v491_v25  ;;  %v496_v32 = vadd.s32 127, %v495_v26  ;;  %v1451_v22 = vmov 65535  }
  0x51   : > { %v398_v30 = vmul.f32 %v397_v21, %v395_v23 }
  0x52   : > { %v494_v34 = vor.u32 %v493_v31, %v492_v24  ;;  %v497_v27 = vshll.u32 %v496_v32, 23  ;;  %v1410_v32 = vld [vmem:[%s1688_s1 + $0x8] sm:$0xff]  }
  0x53   : > { %v399_v33 = vxor.u32 2147483648, %v398_v30 }
  0x54   : > { %v498_v38 = vor.u32 4788187, %v497_v27  ;;  %v501_v39 = vcvt.s32.f32 %v494_v34  ;;  %v1413_v34 = vld [vmem:[%s1689_s2] sm:$0xff]  }
  0x55   : > { %v400_v35 = vsel %vm317_vm2, %v399_v33, %v398_v30  ;;  %vm721_vm2 = vcmp.eq.s32.totalorder %v719_v59, 0  ;;  %v1411_v33 = vld [vmem:[%s1688_s1 + $0x10] sm:$0xff]   ;;  %v884_v27 = vld [vmem:[%s1690_s3] sm:$0xff] }
  0x56   : > { %v403_v36 = vsel %vm316_vm3, %v1525_v7, %v400_v35  ;;  %v499_v40 = vand.u32 2147483647, %v498_v38  ;;  %vm514_vm3 = vcmp.lt.s32.totalorder %v513_v56, 2  ;;  %v886_v35 = vld [vmem:[%s1690_s3 + $0x10] sm:$0xff]  ;;  %v887_v38 = vld [vmem:[%s1690_s3 + $0x18] sm:$0xff] }
  0x57   : > { %1419 = vcosq.f32 %v403_v36 }
  0x58   : > { %1421 = vsinq.f32 %v403_v36  ;;  %v502_v44 = vmul.f32 %v501_v39, %v499_v40  ;;  %v1452_v36 = vmov 0   ;;  %v888_v39 = vld [vmem:[%s1690_s3 + $0x20] sm:$0xff]  ;;  %v889_v40 = vld [vmem:[%s1690_s3 + $0x28] sm:$0xff] }
  0x59   : > { %1407 = vset.pattern.permute.xlu0 %v1452_v36  ;;  %1408 = vset.pattern.permute.xlu1 %v1452_v36 }
  0x5a   : > { %v503_v9 = vxor.u32 2147483648, %v502_v44  ;;  %894 = vperm.xlu0 %1407, %v884_v27   ;;  %904 = vperm.xlu1 %1408, %v886_v35  }
  0x5c   : > { %v504_v47 = vsel %vm421_vm4, %v503_v9, %v502_v44  ;;  %vm720_vm4 = vcmp.lt.s32.totalorder %v719_v59, 2  ;;  %v1045_v44 = vld [vmem:[%s1692_s5] sm:$0xff]  ;;  %v1046_v9 = vld [vmem:[%s1692_s5 + $0x8] sm:$0xff] }
  0x5d   : > { %v507_v48 = vsel %vm420_vm5, %v1528_v8, %v504_v47  ;;  %vm511_vm5 = vweird.f32 %v1528_v8 }
  0x5e   : > { %1423 = vcosq.f32 %v507_v48  ;;  %899 = vperm.xlu0 %1407, %v885_v37   ;;  %909 = vperm.xlu1 %1408, %v887_v38  }
  0x5f   : > { %1425 = vsinq.f32 %v507_v48 }
  0x61   : > { %v1420_v51 = vpop.eup %1419 }
  0x62   : > { %v1422_v52 = vpop.eup %1421  ;;  %v415_v53 = vxor.u32 2147483648, %v1420_v51  ;;  %914 = vperm.xlu0 %1407, %v888_v39   ;;  %919 = vperm.xlu1 %1408, %v889_v40  }
  0x63   : > { %v412_v55 = vxor.u32 2147483648, %v1422_v52 }
  0x64   : > { %v416_v11 = vsel %vm414_vm6, %v415_v53, %v1422_v52  ;;  %v623_v58 = vsel %vm621_vm9, %v415_v53, %v1422_v52  ;;  %vm792_vm6 = vcmask 1041408   ;;  %vm1153_vm9 = vcmask 130048  }
  0x65   : > { %v413_v41 = vsel %vm411_vm7, %v1420_v51, %v412_v55  ;;  %v620_v57 = vsel %vm618_vm8, %v1420_v51, %v412_v55  ;;  %vm793_vm7 = vcmask 1042432   ;;  %v794_v8 = vsel %vm792_vm6, 4294967295, %v1451_v22 }
  0x66   : > { %v417_v60 = vsel %vm410_vm10, %v413_v41, %v416_v11  ;;  %v624_v61 = vsel %vm617_vm11, %v620_v57, %v623_v58  ;;  %v795_v31 = vsel %vm793_vm7, %v794_v8, 0  ;;  %vm952_vm8 = vcmask 523264   ;;  %924 = vperm.xlu0 %1407, %v890_v42   ;;  %929 = vperm.xlu1 %1408, %v891_v43  }
  0x67   : > { %v418_v63 = vsel %vm407_vm12, nan, %v417_v60  ;;  %v625_v3 = vsel %vm407_vm12, nan, %v624_v61  ;;  %1355 = vmatprep.mubr.msk.bf16.mxu1 %vm952_vm8, %v1413_v34  ;;  %vm1208_vm10 = vcmask 1046528  }
  0x68   : > { %v1424_v62 = vpop.eup %1423  ;;  %v731_v6 = vrot.slane %v418_v63, 4  ;;  %v739_v16 = vrot.slane %v625_v3, 4  ;;  %v1416_v3 = vld [vmem:[%s1689_s2 + $0x18] sm:$0xff]  }
  0x69   : > { %v1426_v0 = vpop.eup %1425  ;;  %v519_v2 = vxor.u32 2147483648, %v1424_v62 }
  0x6a   : > { %v516_v29 = vxor.u32 2147483648, %v1426_v0  ;;  %v745_v20 = vsel %vm312_vm1, %v1518_v1, %v731_v6  ;;  %1050 = vperm.xlu0 %1407, %v1045_v44   ;;  %1055 = vperm.xlu1 %1408, %v1046_v9   ;;  %v1418_v44 = vld [vmem:[%s1691_s4 + $0x8] ss:$0 sps:$4 sm:$0x33]   ;;  %v1453_v9 = vmov 0.0  }
  0x6b   : > { %v520_v4 = vsel %vm518_vm13, %v519_v2, %v1426_v0  ;;  %v726_v5 = vsel %vm724_vm14, %v519_v2, %v1426_v0  ;;  %v1414_v2 = vld [vmem:[%s1689_s2 + $0x8] sm:$0xff]  }
  0x6c   : > { %v517_v7 = vsel %vm515_vm15, %v1424_v62, %v516_v29  ;;  %v723_v10 = vsel %vm721_vm2, %v1424_v62, %v516_v29  ;;  %v1415_v29 = vld [vmem:[%s1689_s2 + $0x10] sm:$0xff]  }
  0x6d   : > { %v521_v12 = vsel %vm514_vm3, %v517_v7, %v520_v4  ;;  %v727_v13 = vsel %vm720_vm4, %v723_v10, %v726_v5  ;;  %v1417_v4 = vld [vmem:[%s1691_s4] sm:$0xff]  }
  0x6e   : > { %v522_v17 = vsel %vm511_vm5, nan, %v521_v12  ;;  %v728_v18 = vsel %vm511_vm5, nan, %v727_v13  ;;  %1150 = vperm.xlu0 %1407, %v1147_v45   ;;  %1060 = vperm.xlu1 %1408, %v1047_v46  }
  0x6f   : > { %v732_v19 = vrot.slane %v522_v17, 4  ;;  %v740_v21 = vrot.slane %v728_v18, 4 }
  0x71   : > { %v733_v23 = vsel %vm312_vm1, %v731_v6, %v732_v19  ;;  %v741_v14 = vsel %vm312_vm1, %v739_v16, %v740_v21  ;;  %v746_v15 = vsel %vm312_vm1, %v732_v19, %v739_v16  ;;  %v747_v25 = vsel %vm312_vm1, %v740_v21, 1.0 }
  0x72   : > { %v748_v24 = vpack.c.bf16 %v733_v23, %v745_v20  ;;  %v749_v26 = vpack.c.bf16 %v741_v14, %v746_v15  ;;  %v750_v30 = vpack.c.bf16 %v747_v25, %v747_v25 }
  0x74   : > { %1333 = vmatprep.subr.bf16.mxu0 %v748_v24  ;;  %v797_v1 = vand.u32 %v795_v31, %v750_v30 }
  0x75   : > { %1334 = vmatpush3.bf16.msra.mxu0 %v748_v24 }
  0x76   : > { %1335 = vmatprep.subr.bf16.mxu0 %v749_v26 }
  0x79   : > { %1336 = vmatpush3.bf16.msra.mxu0 %v749_v26 }
  0x7a   : > { %1337 = vmatprep.subr.bf16.mxu0 %v797_v1 }
  0x7d   : > { %1338 = vmatpush3.bf16.msra.mxu0 %v797_v1 }
  0x80   : > { %1340 = vmatmul.mubr.msk.bf16.vlgmr.msra.gmra.mrb[0].mxu0 %vm779_vm0, %v1410_v32 }
  0x81   : > { %1343 = vmatprep.mubr.msk.bf16.mxu0 %vm779_vm0, %v1411_v33 }
  0x88   : > { %1344 = vmatmul.mubr.msk.bf16.gmra.mrb[4].mxu0 %vm779_vm0, %v1412_v28  ;;  %vm1454_vm0 = vmmov 0  }
  0x89   : > { %1371 = vmatprep.mubr.msk.bf16.mxu0 %vm952_vm8, %v1417_v4 }
  0xd9   : > { %v895_v5 = vpop.permute.xlu0 %894  ;;  %v905_v6 = vpop.permute.xlu1 %904 }
  0xdd   : > { %v900_v7 = vpop.permute.xlu0 %899  ;;  %v910_v10 = vpop.permute.xlu1 %909 }
  0xe1   : > { %v915_v17 = vpop.permute.xlu0 %914  ;;  %v920_v22 = vpop.permute.xlu1 %919 }
  0xe5   : > { %v925_v26 = vpop.permute.xlu0 %924  ;;  %v930_v33 = vpop.permute.xlu1 %929 }
  0xe9   : > { %v1051_v46 = vpop.permute.xlu0 %1050 }
 0x153   : > { %v1341_v47 = vpop.f32.mrb[0].mxu0 }
 0x154   : > { %v833_v48 = vpop.f32.mrb[1].mxu0  ;;  %v866_v50 = vmax.f32 %v1341_v47, 0.0 }
 0x155   : > { %v1342_v49 = vpop.f32.mrb[2].mxu0  ;;  %v864_v53 = vmax.f32 %v833_v48, 0.0 }
 0x156   : > { %v867_v51 = vmax.f32 %v1342_v49, 0.0  ;;  %v836_v52 = vpop.f32.mrb[3].mxu0 }
 0x157   : > { %v865_v54 = vmax.f32 %v836_v52, 0.0 }
 0x158   : > { %v881_v55 = vpack.c.bf16 %v867_v51, %v866_v50  ;;  %v1056_v50 = vpop.permute.xlu1 %1055 }
 0x159   : > { %v880_v11 = vpack.c.bf16 %v865_v54, %v864_v53 }
 0x15b   : > { %v1345_v41 = vpop.f32.mrb[4].mxu0  ;;  %1347 = vmatprep.subr.bf16.mxu1 %v880_v11 }
 0x15c   : > { %v849_v56 = vpop.f32.mrb[5].mxu0  ;;  %1348 = vmatpush3.bf16.msra.mxu1 %v880_v11  ;;  %v870_v58 = vmax.f32 %v1345_v41, 0.0  ;;  %v1145_v11 = vld [vmem:[%s1693_s6] sm:$0x3]  ;;  %v1061_v41 = vpop.permute.xlu1 %1060 }
 0x15d   : > { %v1346_v57 = vpop.f32.mrb[6].mxu0  ;;  %1349 = vmatprep.subr.bf16.mxu1 %v881_v55  ;;  %v868_v61 = vmax.f32 %v849_v56, 0.0 }
 0x15e   : > { %v871_v59 = vmax.f32 %v1346_v57, 0.0  ;;  %v852_v60 = vpop.f32.mrb[7].mxu0 }
 0x15f   : > { %v869_v62 = vmax.f32 %v852_v60, 0.0  ;;  %v1151_v60 = vpop.permute.xlu0 %1150 }
 0x160   : > { %v883_v63 = vpack.c.bf16 %v871_v59, %v870_v58  ;;  %1350 = vmatpush3.bf16.msra.mxu1 %v881_v55 }
 0x161   : > { %v882_v0 = vpack.c.bf16 %v869_v62, %v868_v61 }
 0x163   : > { %1351 = vmatprep.subr.bf16.mxu1 %v882_v0 }
 0x164   : > { %1352 = vmatpush3.bf16.msra.mxu1 %v882_v0 }
 0x165   : > { %1353 = vmatprep.subr.bf16.mxu1 %v883_v63 }
 0x168   : > { %1354 = vmatpush3.bf16.msra.mxu1 %v883_v63 }
 0x169   : > { %1375 = vmatprep.subr.bf16.mxu1 %v1453_v9 }
 0x16b   : > { %1356 = vmatmul.mubr.msk.bf16.vlgmr.msra.gmra.mrb[0].mxu1 %vm952_vm8, %v1414_v2 }
 0x16c   : > { %1359 = vmatprep.mubr.msk.bf16.mxu1 %vm952_vm8, %v1415_v29 }
 0x173   : > { %1360 = vmatmul.mubr.msk.bf16.gmra.mrb[4].mxu1 %vm952_vm8, %v1416_v3 }
 0x174   : > { %1377 = vmatprep.mubr.msk.bf16.mxu1 %vm1454_vm0, %v1453_v9 }
 0x23e   : > { %v1357_v12 = vpop.f32.mrb[0].mxu1 }
 0x23f   : > { %v1008_v13 = vadd.f32 %v1357_v12, %v905_v6  ;;  %v999_v16 = vpop.f32.mrb[1].mxu1 }
 0x240   : > { %v1000_v18 = vadd.f32 %v999_v16, %v895_v5  ;;  %v1358_v19 = vpop.f32.mrb[2].mxu1 }
 0x241   : > { %v1011_v20 = vadd.f32 %v1358_v19, %v910_v10  ;;  %v1002_v21 = vpop.f32.mrb[3].mxu1  ;;  %v1032_v23 = vmax.f32 %v1008_v13, 0.0  ;;  %v1134_v10 = vlaneseq }
 0x242   : > { %v1003_v8 = vadd.f32 %v1002_v21, %v900_v7  ;;  %v1030_v15 = vmax.f32 %v1000_v18, 0.0 }
 0x243   : > { %v1033_v14 = vmax.f32 %v1011_v20, 0.0  ;;  %v1135_v16 = vshrl.u32 %v1134_v10, 7 }
 0x244   : > { %v1031_v25 = vmax.f32 %v1003_v8, 0.0 }
 0x245   : > { %v1042_v24 = vpack.c.bf16 %v1033_v14, %v1032_v23  ;;  %v1136_v18 = vsub.s32 0, %v1135_v16 }
 0x246   : > { %v1041_v30 = vpack.c.bf16 %v1031_v25, %v1030_v15  ;;  %v1361_v31 = vpop.f32.mrb[4].mxu1 }
 0x247   : > { %v1024_v1 = vadd.f32 %v1361_v31, %v925_v26  ;;  %v1015_v32 = vpop.f32.mrb[5].mxu1 }
 0x248   : > { %v1016_v28 = vadd.f32 %v1015_v32, %v915_v17  ;;  %v1362_v34 = vpop.f32.mrb[6].mxu1  ;;  %1363 = vmatprep.subr.bf16.mxu0 %v1041_v30 }
 0x249   : > { %v1027_v27 = vadd.f32 %v1362_v34, %v930_v33  ;;  %v1018_v35 = vpop.f32.mrb[7].mxu1  ;;  %1364 = vmatpush3.bf16.msra.mxu0 %v1041_v30  ;;  %v1036_v37 = vmax.f32 %v1024_v1, 0.0 }
 0x24a   : > { %v1019_v36 = vadd.f32 %v1018_v35, %v920_v22  ;;  %1365 = vmatprep.subr.bf16.mxu0 %v1042_v24  ;;  %v1034_v39 = vmax.f32 %v1016_v28, 0.0 }
 0x24b   : > { %v1037_v38 = vmax.f32 %v1027_v27, 0.0 }
 0x24c   : > { %v1035_v40 = vmax.f32 %v1019_v36, 0.0 }
 0x24d   : > { %v1044_v42 = vpack.c.bf16 %v1037_v38, %v1036_v37  ;;  %1366 = vmatpush3.bf16.msra.mxu0 %v1042_v24 }
 0x24e   : > { %v1043_v43 = vpack.c.bf16 %v1035_v40, %v1034_v39 }
 0x250   : > { %1367 = vmatprep.subr.bf16.mxu0 %v1043_v43 }
 0x251   : > { %1368 = vmatpush3.bf16.msra.mxu0 %v1043_v43 }
 0x252   : > { %1369 = vmatprep.subr.bf16.mxu0 %v1044_v42 }
 0x255   : > { %1370 = vmatpush3.bf16.msra.mxu0 %v1044_v42 }
 0x258   : > { %1372 = vmatmul.mubr.msk.bf16.vlgmr.msra.gmra.mrb[8].mxu0 %vm952_vm8, %v1418_v44 }
 0x32b   : > { %v1373_v45 = vpop.f32.mrb[8].mxu0 }
 0x32c   : > { %v1111_v47 = vpop.f32.mrb[9].mxu0  ;;  %v1120_v56 = vadd.f32 %v1373_v45, %v1061_v41 }
 0x32d   : > { %v1112_v48 = vadd.f32 %v1111_v47, %v1051_v46  ;;  %v1374_v49 = vpop.f32.mrb[10].mxu0 }
 0x32e   : > { %v1114_v51 = vpop.f32.mrb[11].mxu0  ;;  %v1139_v57 = vsub.f32 0.0, %v1120_v56  ;;  %v1127_v58 = vmul.f32 %v1120_v56, %v1120_v56 }
 0x32f   : > { %v1115_v52 = vadd.f32 %v1114_v51, %v1056_v50  ;;  %v1125_v53 = vmax.f32 %v1112_v48, 0.0 }
 0x330   : > { %v1140_v59 = vmul.f32 1.442695, %v1139_v57  ;;  %v1129_v62 = vrot.slane %v1127_v58, 1 }
 0x331   : > { %v1126_v54 = vmax.f32 %v1115_v52, 0.0 }
 0x332   : > { %1427 = vpow2.f32 %v1140_v59  ;;  %v1131_v4 = vadd.f32 %v1129_v62, %v1127_v58 }
 0x333   : > { %v1146_v55 = vpack.c.bf16 %v1126_v54, %v1125_v53 }
 0x334   : > { %v1132_v6 = vmax.f32 %v1131_v4, 1e-24 }
 0x335   : > { %1376 = vmatpush3.bf16.msra.mxu1 %v1146_v55 }
 0x338   : > { %1378 = vmatmul.mubr.msk.bf16.vlgmr.msra.gmra.mrb[8].mxu1 %vm1153_vm9, %v1145_v11 }
 0x33c   : > { %v1428_v7 = vpop.eup %1427 }
 0x33d   : > { %v1142_v12 = vadd.f32 1.0, %v1428_v7 }
 0x40b   : > { %v1191_v61 = vpop.f32.mrb[8].mxu1 }
 0x40c   : > { %v1192_v63 = vadd.f32 %v1191_v61, %v1151_v60  ;;  %v1379_v0 = vpop.f32.mrb[9].mxu1 }
 0x40d   : > { %v1194_v2 = vpop.f32.mrb[10].mxu1 }
 0x40e   : > { %v1197_v29 = vsub.f32 0.0, %v1192_v63  ;;  %v1380_v3 = vpop.f32.mrb[11].mxu1 }
 0x410   : > { %v1198_v5 = vmul.f32 1.442695, %v1197_v29 }
 0x412   : > { %1429 = vpow2.f32 %v1198_v5 }
 0x413   : > { %1431 = vrsqrt.f32 %v1132_v6 }
 0x414   : > { %1433 = vrcp.f32 %v1142_v12 }
 0x41c   : > { %v1430_v13 = vpop.eup %1429 }
 0x41d   : > { %v1200_v17 = vadd.f32 1.0, %v1430_v13  ;;  %v1432_v19 = vpop.eup %1431 }
 0x41e   : > { %v1137_v20 = vrot.slane %v1432_v19, %v1136_v18  ;;  %v1434_v21 = vpop.eup %1433 }
 0x41f   : > { %1435 = vrcp.f32 %v1200_v17 }
 0x420   : > { %v1138_v8 = vmul.f32 %v1137_v20, %v1120_v56 }
 0x422   : > { %v1206_v14 = vsel %vm792_vm6, %v1138_v8, %v1434_v21 }
 0x429   : > { %v1436_v22 = vpop.eup %1435 }
 0x42a   : > { %v1204_v23 = vrot.slane %v1436_v22, 4 }
 0x42c   : > { %v1207_v15 = vsel %vm312_vm1, %v1206_v14, %v1204_v23 }
 0x42d   : > { %v1209_v25 = vsel %vm1208_vm10, %v1207_v15, 0.0 }
 0x42e   : > { %1210 = vst [vmem:[%s300_s20] sm:$0xff] %v1209_v25 }
 0x42f PF: > { %s18_s27 = sadd.s32 1, %s1443_s27  }
 0x430   : > { %p15_p4 = scmp.ge.s32.totalorder %s18_s27, 4  }
 0x432   :  { %17 = sbr.rel (!%p15_p4) target bundleno = 1 (0x1), region = 82 }

</bundles_post_ra>
